<compile_context>
chip_gen: v7x
topology: tpu7x:2x2x1
jax: 0.10.0
libtpu: 0.0.40
codegen_flags: <defaults>
</compile_context>

<pallas_src>
import jax
import jax.numpy as jnp
from jax.experimental import pallas as pl
from jax.experimental.pallas import tpu as pltpu


# ----------------------------- configuration -------------------------------
X_DIM = 16
NUM_EVENT = 2
NUM_CATEGORY = 8
H_DIM_SHARED = 32
H_DIM_CS = 32
NUM_LAYERS_SHARED = 2
NUM_LAYERS_CS = 2
BATCH = 8

LANE = 128          # every fused width is padded to one full lane group
MAX_TILE_M = 512    # batch row tile ceiling (measured sweet spot; sweep 256/512/1024)


def _round_up(x, m):
    return ((x + m - 1) // m) * m


def _choose_tile(b):
    """Row tile: multiple of 16, waste < tm, >= 2 grid steps when B allows."""
    if b <= 128:
        return max(16, _round_up(b, 16))
    tm = 128
    for cand in (MAX_TILE_M, 256):
        if cand <= MAX_TILE_M and b >= 2 * cand:
            tm = cand
            break
    return tm


# --------------------------------- kernel ----------------------------------
def _make_kernel(num_hidden_layers, num_event, num_category):
    """DeepHit forward kernel.

    Ref order: x, W_0 ... W_{H-1}, W_out, o_ref.
    All weights are [128, 128] bf16 with the bias folded into row 127 (the
    activation's "ones lane").  Hidden layers use ReLU; the output layer is
    followed by a per-event softmax over the category axis.
    """

    def kernel(*refs):
        x_ref = refs[0]
        w_refs = refs[1:1 + num_hidden_layers + 1]
        o_ref = refs[-1]

        # [tm, 128]; lane 127 is the ones lane (carries the bias row).
        h = x_ref[...].astype(jnp.bfloat16)

        # hidden layers (shared + fused cause-specific), all ReLU.
        for l in range(num_hidden_layers):
            h = jnp.maximum(
                jnp.dot(h, w_refs[l][...], preferred_element_type=jnp.float32),
                0.0).astype(jnp.bfloat16)

        # dropout(p=0.4) is identity in eval mode.

        # output layer (no activation); bias comes from the ones lane.
        logits = jnp.dot(h, w_refs[num_hidden_layers][...],
                         preferred_element_type=jnp.float32)   # [tm, 128] f32

        # per-event softmax via masked segment reductions; masks built once.
        lane = jax.lax.broadcasted_iota(jnp.int32, logits.shape, 1)
        masks = [(lane >= e * num_category) & (lane < (e + 1) * num_category)
                 for e in range(num_event)]
        neg = jnp.float32(-1e30)

        m_full = jnp.zeros_like(logits)
        for mask in masks:
            m_e = jnp.max(jnp.where(mask, logits, neg), axis=-1, keepdims=True)
            m_full = jnp.where(mask, m_e, m_full)

        ex = jnp.exp(logits - m_full)

        # init to ones so padded lanes (never covered by a mask) don't hit
        # reciprocal(0) -> inf; those lanes are sliced off in the wrapper.
        s_full = jnp.ones_like(logits)
        for mask in masks:
            s_e = jnp.sum(jnp.where(mask, ex, 0.0), axis=-1, keepdims=True)
            s_full = jnp.where(mask, s_e, s_full)

        # single full-lane (unmasked) store.
        o_ref[...] = ex * pl.reciprocal(s_full, approx=True)

    return kernel


# ---------------------------- parameter fusion ------------------------------
def _fuse_params(params):
    """Fuse per-event towers, pad widths to 128 lanes, fold biases.

    params: flat list [(W [in,out] f32, b [1,out] f32), ...] ordered as
            shared layers, event-0 CS layers, ..., event-(E-1) CS layers, out.
    Returns a list of [128, 128] bf16 weights.  Row 127 of each weight holds
    the bias; W[127, 127] = 1 for every layer except the output layer so the
    activation's ones lane survives the matmul (and ReLU(1) = 1).
    """
    idx = 0
    raw = []   # list of (W [in, out] f32, b [out] f32)

    for _ in range(NUM_LAYERS_SHARED):
        w, b = params[idx]; idx += 1
        raw.append((w, b.reshape(-1)))

    cs = []
    for _ in range(NUM_EVENT):
        cs.append(params[idx:idx + NUM_LAYERS_CS])
        idx += NUM_LAYERS_CS
    for l in range(NUM_LAYERS_CS):
        ws = [cs[e][l][0] for e in range(NUM_EVENT)]
        bs = [cs[e][l][1].reshape(-1) for e in range(NUM_EVENT)]
        if l == 0:
            # all towers read the same shared activation -> horizontal concat
            wf = jnp.concatenate(ws, axis=1)                 # [h_shared, E*h_cs]
        else:
            # each tower only sees its own slice -> block-diagonal
            rows = sum(w.shape[0] for w in ws)
            cols = sum(w.shape[1] for w in ws)
            wf = jnp.zeros((rows, cols), jnp.float32)
            r = c = 0
            for w in ws:
                wf = wf.at[r:r + w.shape[0], c:c + w.shape[1]].set(w)
                r += w.shape[0]
                c += w.shape[1]
        raw.append((wf, jnp.concatenate(bs)))

    w_out, b_out = params[idx]
    raw.append((w_out, b_out.reshape(-1)))

    fused = []
    n_layers = len(raw)
    for li, (w, b) in enumerate(raw):
        fin, fout = w.shape
        assert fin <= LANE - 1 and fout <= LANE - 1, "widths must fit below the ones lane"
        wp = jnp.zeros((LANE, LANE), jnp.float32)
        wp = wp.at[:fin, :fout].set(w)
        wp = wp.at[LANE - 1, :fout].set(b)          # bias row (ones lane input)
        if li < n_layers - 1:
            wp = wp.at[LANE - 1, LANE - 1].set(1.0)  # keep ones lane alive
        fused.append(wp.astype(jnp.bfloat16))
    return fused


# -------------------------------- wrapper -----------------------------------
def _deephit_forward(x, params):
    """x: [B, x_dim] f32; params: flat list of (W [in,out], b [1,out]) f32."""
    b, x_dim = x.shape
    weights = _fuse_params(params)
    num_hidden_layers = len(weights) - 1
    out_dim = NUM_EVENT * NUM_CATEGORY

    tm = _choose_tile(b)
    b_pad = _round_up(b, tm)
    grid = (b_pad // tm,)

    # pad x to 128 lanes; lane 127 carries the ones column (bias folding).
    x_pad = jnp.zeros((b_pad, LANE), jnp.float32)
    x_pad = x_pad.at[:b, :x_dim].set(x)
    x_pad = x_pad.at[:, LANE - 1].set(1.0)

    kernel = _make_kernel(num_hidden_layers, NUM_EVENT, NUM_CATEGORY)

    in_specs = [pl.BlockSpec((tm, LANE), lambda i: (i, 0))]
    in_specs += [pl.BlockSpec((LANE, LANE), lambda i: (0, 0)) for _ in weights]

    out_flat = pl.pallas_call(
        kernel,
        out_shape=jax.ShapeDtypeStruct((b_pad, LANE), jnp.float32),
        grid=grid,
        in_specs=in_specs,
        out_specs=pl.BlockSpec((tm, LANE), lambda i: (i, 0)),
        compiler_params=pltpu.CompilerParams(
            dimension_semantics=("parallel",)),
    )(x_pad, *weights)

    return out_flat[:b, :out_dim].reshape(b, NUM_EVENT, NUM_CATEGORY)


deephit_forward = jax.jit(_deephit_forward)


# ------------------------- pure-JAX reference (f32) -------------------------
def deephit_reference(x, params):
    idx = 0
    h = x
    for _ in range(NUM_LAYERS_SHARED):
        w, b = params[idx]; idx += 1
        h = jnp.maximum(h @ w + b, 0.0)
    outs = []
    for _ in range(NUM_EVENT):
        he = h
        for _ in range(NUM_LAYERS_CS):
            w, b = params[idx]; idx += 1
            he = jnp.maximum(he @ w + b, 0.0)
        outs.append(he)
    concat = jnp.concatenate(outs, axis=-1)
    w, b = params[idx]
    logits = (concat @ w + b).reshape(x.shape[0], NUM_EVENT, NUM_CATEGORY)
    return jax.nn.softmax(logits, axis=-1)


# ------------------------------ initialization ------------------------------
def init_params(key):
    """Xavier-uniform weights (stored as W^T, i.e. [in, out]), zero biases."""
    params = []

    def xavier(key, fan_in, fan_out):
        limit = jnp.sqrt(6.0 / (fan_in + fan_out))
        return jax.random.uniform(
            key, (fan_in, fan_out), jnp.float32, minval=-limit, maxval=limit)

    keys = jax.random.split(key, NUM_LAYERS_SHARED + NUM_EVENT * NUM_LAYERS_CS + 1)
    ki = 0

    for i in range(NUM_LAYERS_SHARED):
        fan_in = X_DIM if i == 0 else H_DIM_SHARED
        params.append((xavier(keys[ki], fan_in, H_DIM_SHARED),
                       jnp.zeros((1, H_DIM_SHARED), jnp.float32)))
        ki += 1

    for _ in range(NUM_EVENT):
        for i in range(NUM_LAYERS_CS):
            fan_in = H_DIM_SHARED if i == 0 else H_DIM_CS
            params.append((xavier(keys[ki], fan_in, H_DIM_CS),
                           jnp.zeros((1, H_DIM_CS), jnp.float32)))
            ki += 1

    params.append((xavier(keys[ki], NUM_EVENT * H_DIM_CS,
                          NUM_EVENT * NUM_CATEGORY),
                   jnp.zeros((1, NUM_EVENT * NUM_CATEGORY), jnp.float32)))
    return params


if __name__ == "__main__":
    key = jax.random.PRNGKey(0)
    k_x, k_p = jax.random.split(key)

    x = jax.random.normal(k_x, (BATCH, X_DIM), jnp.float32)
    params = init_params(k_p)

    out = deephit_forward(x, params)
    out = jax.block_until_ready(out)

    assert out.shape == (BATCH, NUM_EVENT, NUM_CATEGORY)
    # finite everywhere (padded softmax lanes are guarded in-kernel)
    assert bool(jnp.all(jnp.isfinite(out)))
    # softmax rows must sum to ~1 (approx reciprocal -> relaxed tolerance)
    assert jnp.allclose(jnp.sum(out, axis=-1), 1.0, atol=1e-2)
    # match the f32 reference (bf16 weights + approx recip -> relaxed tolerance)
    ref = deephit_reference(x, params)
    assert jnp.allclose(out, ref, atol=3e-2)

    print("KERNEL_OK")
</pallas_src>

<mosaic_0001>
module attributes {stable_mosaic.version = 11 : i64} {
  func.func @kernel(%arg0: i32, %arg1: memref<16x128xf32, #tpu.memory_space<vmem>>, %arg2: memref<128x128xbf16, #tpu.memory_space<vmem>>, %arg3: memref<128x128xbf16, #tpu.memory_space<vmem>>, %arg4: memref<128x128xbf16, #tpu.memory_space<vmem>>, %arg5: memref<128x128xbf16, #tpu.memory_space<vmem>>, %arg6: memref<128x128xbf16, #tpu.memory_space<vmem>>, %arg7: memref<16x128xf32, #tpu.memory_space<vmem>>) attributes {dimension_semantics = [#tpu.dimension_semantics<parallel>], iteration_bounds = array<i64: 1>, scalar_prefetch = 0 : i64, scratch_operands = 0 : i64, tpu.core_type = #tpu.core_type<tc>, window_params = [{transform_indices = @transform_0, window_bounds = array<i64: 16, 128>}, {pipeline_mode = #tpu.pipeline_mode<synchronous>, transform_indices = @transform_1, window_bounds = array<i64: 128, 128>}, {pipeline_mode = #tpu.pipeline_mode<synchronous>, transform_indices = @transform_2, window_bounds = array<i64: 128, 128>}, {pipeline_mode = #tpu.pipeline_mode<synchronous>, transform_indices = @transform_3, window_bounds = array<i64: 128, 128>}, {pipeline_mode = #tpu.pipeline_mode<synchronous>, transform_indices = @transform_4, window_bounds = array<i64: 128, 128>}, {pipeline_mode = #tpu.pipeline_mode<synchronous>, transform_indices = @transform_5, window_bounds = array<i64: 128, 128>}, {transform_indices = @transform_6, window_bounds = array<i64: 16, 128>}]} {
    %c0 = arith.constant 0 : index
    %c0_0 = arith.constant 0 : index
    %0 = vector.load %arg1[%c0, %c0_0] : memref<16x128xf32, #tpu.memory_space<vmem>>, vector<16x128xf32>
    %1 = arith.truncf %0 : vector<16x128xf32> to vector<16x128xbf16>
    %c0_1 = arith.constant 0 : index
    %c0_2 = arith.constant 0 : index
    %2 = vector.load %arg2[%c0_1, %c0_2] : memref<128x128xbf16, #tpu.memory_space<vmem>>, vector<128x128xbf16>
    %cst = arith.constant dense<0.000000e+00> : vector<16x128xf32>
    %3 = tpu.matmul %1, %2, %cst {dimension_numbers = #tpu.dot_dimension_numbers<[1], [0], [0], [1], [0, 0, 1, 1], [], []>} : vector<16x128xbf16>, vector<128x128xbf16>, vector<16x128xf32> -> vector<16x128xf32>
    %cst_3 = arith.constant 0.000000e+00 : f32
    %4 = vector.broadcast %cst_3 : f32 to vector<16x128xf32>
    %5 = arith.maximumf %3, %4 : vector<16x128xf32>
    %6 = arith.truncf %5 : vector<16x128xf32> to vector<16x128xbf16>
    %c0_4 = arith.constant 0 : index
    %c0_5 = arith.constant 0 : index
    %7 = vector.load %arg3[%c0_4, %c0_5] : memref<128x128xbf16, #tpu.memory_space<vmem>>, vector<128x128xbf16>
    %cst_6 = arith.constant dense<0.000000e+00> : vector<16x128xf32>
    %8 = tpu.matmul %6, %7, %cst_6 {dimension_numbers = #tpu.dot_dimension_numbers<[1], [0], [0], [1], [0, 0, 1, 1], [], []>} : vector<16x128xbf16>, vector<128x128xbf16>, vector<16x128xf32> -> vector<16x128xf32>
    %cst_7 = arith.constant 0.000000e+00 : f32
    %9 = vector.broadcast %cst_7 : f32 to vector<16x128xf32>
    %10 = arith.maximumf %8, %9 : vector<16x128xf32>
    %11 = arith.truncf %10 : vector<16x128xf32> to vector<16x128xbf16>
    %c0_8 = arith.constant 0 : index
    %c0_9 = arith.constant 0 : index
    %12 = vector.load %arg4[%c0_8, %c0_9] : memref<128x128xbf16, #tpu.memory_space<vmem>>, vector<128x128xbf16>
    %cst_10 = arith.constant dense<0.000000e+00> : vector<16x128xf32>
    %13 = tpu.matmul %11, %12, %cst_10 {dimension_numbers = #tpu.dot_dimension_numbers<[1], [0], [0], [1], [0, 0, 1, 1], [], []>} : vector<16x128xbf16>, vector<128x128xbf16>, vector<16x128xf32> -> vector<16x128xf32>
    %cst_11 = arith.constant 0.000000e+00 : f32
    %14 = vector.broadcast %cst_11 : f32 to vector<16x128xf32>
    %15 = arith.maximumf %13, %14 : vector<16x128xf32>
    %16 = arith.truncf %15 : vector<16x128xf32> to vector<16x128xbf16>
    %c0_12 = arith.constant 0 : index
    %c0_13 = arith.constant 0 : index
    %17 = vector.load %arg5[%c0_12, %c0_13] : memref<128x128xbf16, #tpu.memory_space<vmem>>, vector<128x128xbf16>
    %cst_14 = arith.constant dense<0.000000e+00> : vector<16x128xf32>
    %18 = tpu.matmul %16, %17, %cst_14 {dimension_numbers = #tpu.dot_dimension_numbers<[1], [0], [0], [1], [0, 0, 1, 1], [], []>} : vector<16x128xbf16>, vector<128x128xbf16>, vector<16x128xf32> -> vector<16x128xf32>
    %cst_15 = arith.constant 0.000000e+00 : f32
    %19 = vector.broadcast %cst_15 : f32 to vector<16x128xf32>
    %20 = arith.maximumf %18, %19 : vector<16x128xf32>
    %21 = arith.truncf %20 : vector<16x128xf32> to vector<16x128xbf16>
    %c0_16 = arith.constant 0 : index
    %c0_17 = arith.constant 0 : index
    %22 = vector.load %arg6[%c0_16, %c0_17] : memref<128x128xbf16, #tpu.memory_space<vmem>>, vector<128x128xbf16>
    %cst_18 = arith.constant dense<0.000000e+00> : vector<16x128xf32>
    %23 = tpu.matmul %21, %22, %cst_18 {dimension_numbers = #tpu.dot_dimension_numbers<[1], [0], [0], [1], [0, 0, 1, 1], [], []>} : vector<16x128xbf16>, vector<128x128xbf16>, vector<16x128xf32> -> vector<16x128xf32>
    %24 = tpu.iota {dimensions = array<i32: 1>} : vector<16x128xi32>
    %c0_i32 = arith.constant 0 : i32
    %25 = vector.broadcast %c0_i32 : i32 to vector<16x128xi32>
    %26 = arith.cmpi sge, %24, %25 : vector<16x128xi32>
    %c8_i32 = arith.constant 8 : i32
    %27 = vector.broadcast %c8_i32 : i32 to vector<16x128xi32>
    %28 = arith.cmpi slt, %24, %27 : vector<16x128xi32>
    %29 = arith.andi %26, %28 : vector<16x128xi1>
    %c8_i32_19 = arith.constant 8 : i32
    %30 = vector.broadcast %c8_i32_19 : i32 to vector<16x128xi32>
    %31 = arith.cmpi sge, %24, %30 : vector<16x128xi32>
    %c16_i32 = arith.constant 16 : i32
    %32 = vector.broadcast %c16_i32 : i32 to vector<16x128xi32>
    %33 = arith.cmpi slt, %24, %32 : vector<16x128xi32>
    %34 = arith.andi %31, %33 : vector<16x128xi1>
    %cst_20 = arith.constant 0.000000e+00 : f32
    %35 = vector.broadcast %cst_20 : f32 to vector<16x128xf32>
    %cst_21 = arith.constant -1.000000e+30 : f32
    %36 = vector.broadcast %cst_21 : f32 to vector<16x128xf32>
    %37 = arith.select %29, %23, %36 : vector<16x128xi1>, vector<16x128xf32>
    %cst_22 = arith.constant dense<0xFF800000> : vector<16xf32>
    %38 = vector.multi_reduction <maximumf>, %37, %cst_22 [1] : vector<16x128xf32> to vector<16xf32>
    %39 = vector.shape_cast %38 : vector<16xf32> to vector<16x1xf32>
    %40 = vector.shape_cast %39 : vector<16x1xf32> to vector<16x1xf32>
    %41 = vector.broadcast %40 : vector<16x1xf32> to vector<16x128xf32>
    %42 = arith.select %29, %41, %35 : vector<16x128xi1>, vector<16x128xf32>
    %cst_23 = arith.constant -1.000000e+30 : f32
    %43 = vector.broadcast %cst_23 : f32 to vector<16x128xf32>
    %44 = arith.select %34, %23, %43 : vector<16x128xi1>, vector<16x128xf32>
    %cst_24 = arith.constant dense<0xFF800000> : vector<16xf32>
    %45 = vector.multi_reduction <maximumf>, %44, %cst_24 [1] : vector<16x128xf32> to vector<16xf32>
    %46 = vector.shape_cast %45 : vector<16xf32> to vector<16x1xf32>
    %47 = vector.shape_cast %46 : vector<16x1xf32> to vector<16x1xf32>
    %48 = vector.broadcast %47 : vector<16x1xf32> to vector<16x128xf32>
    %49 = arith.select %34, %48, %42 : vector<16x128xi1>, vector<16x128xf32>
    %50 = arith.subf %23, %49 : vector<16x128xf32>
    %51 = math.exp %50 : vector<16x128xf32>
    %cst_25 = arith.constant 1.000000e+00 : f32
    %52 = vector.broadcast %cst_25 : f32 to vector<16x128xf32>
    %cst_26 = arith.constant 0.000000e+00 : f32
    %53 = vector.broadcast %cst_26 : f32 to vector<16x128xf32>
    %54 = arith.select %29, %51, %53 : vector<16x128xi1>, vector<16x128xf32>
    %cst_27 = arith.constant dense<0.000000e+00> : vector<16xf32>
    %55 = vector.multi_reduction <add>, %54, %cst_27 [1] : vector<16x128xf32> to vector<16xf32>
    %56 = vector.shape_cast %55 : vector<16xf32> to vector<16x1xf32>
    %57 = vector.shape_cast %56 : vector<16x1xf32> to vector<16x1xf32>
    %58 = vector.broadcast %57 : vector<16x1xf32> to vector<16x128xf32>
    %59 = arith.select %29, %58, %52 : vector<16x128xi1>, vector<16x128xf32>
    %cst_28 = arith.constant 0.000000e+00 : f32
    %60 = vector.broadcast %cst_28 : f32 to vector<16x128xf32>
    %61 = arith.select %34, %51, %60 : vector<16x128xi1>, vector<16x128xf32>
    %cst_29 = arith.constant dense<0.000000e+00> : vector<16xf32>
    %62 = vector.multi_reduction <add>, %61, %cst_29 [1] : vector<16x128xf32> to vector<16xf32>
    %63 = vector.shape_cast %62 : vector<16xf32> to vector<16x1xf32>
    %64 = vector.shape_cast %63 : vector<16x1xf32> to vector<16x1xf32>
    %65 = vector.broadcast %64 : vector<16x1xf32> to vector<16x128xf32>
    %66 = arith.select %34, %65, %59 : vector<16x128xi1>, vector<16x128xf32>
    %67 = tpu.reciprocal %66 {approx = true} : vector<16x128xf32> -> vector<16x128xf32>
    %68 = arith.mulf %51, %67 : vector<16x128xf32>
    %c0_30 = arith.constant 0 : index
    %c0_31 = arith.constant 0 : index
    %69 = vector.load %arg7[%c0_30, %c0_31] : memref<16x128xf32, #tpu.memory_space<vmem>>, vector<16x128xf32>
    tpu.vector_store %arg7[%c0_30, %c0_31], %68 {strides = array<i32>} : memref<16x128xf32, #tpu.memory_space<vmem>>, vector<16x128xf32>,
    return
  }
  func.func @transform_0(%arg0: i32) -> (i32, i32) {
    %c0_i32 = arith.constant 0 : i32
    %c0_i32_0 = arith.constant 0 : i32
    return %arg0, %c0_i32 : i32, i32
  }
  func.func @transform_1(%arg0: i32) -> (i32, i32) {
    %c0_i32 = arith.constant 0 : i32
    %c0_i32_0 = arith.constant 0 : i32
    %c0_i32_1 = arith.constant 0 : i32
    return %c0_i32, %c0_i32_0 : i32, i32
  }
  func.func @transform_2(%arg0: i32) -> (i32, i32) {
    %c0_i32 = arith.constant 0 : i32
    %c0_i32_0 = arith.constant 0 : i32
    %c0_i32_1 = arith.constant 0 : i32
    return %c0_i32, %c0_i32_0 : i32, i32
  }
  func.func @transform_3(%arg0: i32) -> (i32, i32) {
    %c0_i32 = arith.constant 0 : i32
    %c0_i32_0 = arith.constant 0 : i32
    %c0_i32_1 = arith.constant 0 : i32
    return %c0_i32, %c0_i32_0 : i32, i32
  }
  func.func @transform_4(%arg0: i32) -> (i32, i32) {
    %c0_i32 = arith.constant 0 : i32
    %c0_i32_0 = arith.constant 0 : i32
    %c0_i32_1 = arith.constant 0 : i32
    return %c0_i32, %c0_i32_0 : i32, i32
  }
  func.func @transform_5(%arg0: i32) -> (i32, i32) {
    %c0_i32 = arith.constant 0 : i32
    %c0_i32_0 = arith.constant 0 : i32
    %c0_i32_1 = arith.constant 0 : i32
    return %c0_i32, %c0_i32_0 : i32, i32
  }
  func.func @transform_6(%arg0: i32) -> (i32, i32) {
    %c0_i32 = arith.constant 0 : i32
    %c0_i32_0 = arith.constant 0 : i32
    return %arg0, %c0_i32 : i32, i32
  }
}

</mosaic_0001>

<bundles_post_ra>
// kernel: _deephit_forward.1
= control target key start
LH: loop header
LB: loop body
LE: loop exit
PB: predicated region body
PF: predicated region fallthrough
CT: control target
= control target key end

     0   :  { %v855_v0 = vmov 0.0   ;;  %vm856_vm0 = vmmov 0   ;;  %s1102_s1 = inlined_call_operand.vmem [shape: bf16[128,128], index: 1, kind: input, shape index: {}]   ;;  %s1103_s2 = inlined_call_operand.vmem [shape: bf16[128,128], index: 2, kind: input, shape index: {}]   ;;  %s1104_s0 = inlined_call_operand.vmem [shape: f32[16,128], index: 0, kind: input, shape index: {}]   ;;  %s1105_s3 = inlined_call_operand.vmem [shape: bf16[128,128], index: 3, kind: input, shape index: {}]   ;;  %s1106_s4 = inlined_call_operand.vmem [shape: bf16[128,128], index: 4, kind: input, shape index: {}]   ;;  %s1107_s5 = inlined_call_operand.vmem [shape: bf16[128,128], index: 5, kind: input, shape index: {}]   ;;  %s1108_s6 = inlined_call_operand.vmem [shape: f32[16,128], index: 6, kind: output, shape index: {}]  }
   0x1   :  { %705 = vmatprep.subr.bf16.mxu0 %v855_v0  ;;  %v807_v1 = vld [vmem:[%s1102_s1] sm:$0xff]   ;;  %721 = vmatprep.mubr.msk.bf16.mxu0 %vm856_vm0, %v855_v0  ;;  %v808_v2 = vld [vmem:[%s1102_s1 + $0x8] sm:$0xff]   ;;  %v809_v3 = vld [vmem:[%s1102_s1 + $0x10] sm:$0xff]  }
   0x2   :  { %725 = vmatprep.subr.bf16.mxu1 %v855_v0  ;;  %741 = vmatprep.mubr.msk.bf16.mxu1 %vm856_vm0, %v855_v0  ;;  %v815_v4 = vld [vmem:[%s1103_s2] sm:$0xff]   ;;  %v810_v5 = vld [vmem:[%s1102_s1 + $0x18] sm:$0xff]   ;;  %v816_v6 = vld [vmem:[%s1103_s2 + $0x8] sm:$0xff]  }
   0x3   :  { %706 = vmatpush3.bf16.msra.mxu0 %v807_v1  ;;  %726 = vmatpush3.bf16.msra.mxu1 %v815_v4  ;;  %v811_v7 = vld [vmem:[%s1102_s1 + $0x20] sm:$0xff]   ;;  %v817_v8 = vld [vmem:[%s1103_s2 + $0x10] sm:$0xff]   ;;  %v812_v9 = vld [vmem:[%s1102_s1 + $0x28] sm:$0xff]  }
   0x4   :  { %707 = vmatprep.subr.bf16.mxu0 %v855_v0  ;;  %727 = vmatprep.subr.bf16.mxu1 %v855_v0  ;;  %v818_v10 = vld [vmem:[%s1103_s2 + $0x18] sm:$0xff]   ;;  %v813_v11 = vld [vmem:[%s1102_s1 + $0x30] sm:$0xff]   ;;  %v819_v12 = vld [vmem:[%s1103_s2 + $0x20] sm:$0xff]  }
   0x5   :  { %v814_v13 = vld [vmem:[%s1102_s1 + $0x38] sm:$0xff]   ;;  %v24_v14 = vld [vmem:[%s1104_s0] sm:$0xff]  ;;  %v25_v15 = vld [vmem:[%s1104_s0 + $0x8] sm:$0xff] }
   0x6   :  { %v820_v16 = vld [vmem:[%s1103_s2 + $0x28] sm:$0xff]   ;;  %v26_v17 = vpack.c.bf16 %v25_v15, %v24_v14  ;;  %v821_v18 = vld [vmem:[%s1103_s2 + $0x30] sm:$0xff]   ;;  %v822_v19 = vld [vmem:[%s1103_s2 + $0x38] sm:$0xff]  }
   0x7   :  { %708 = vmatpush3.bf16.msra.mxu0 %v808_v2  ;;  %728 = vmatpush3.bf16.msra.mxu1 %v816_v6  ;;  %v823_v20 = vld [vmem:[%s1105_s3] sm:$0xff]   ;;  %v824_v21 = vld [vmem:[%s1105_s3 + $0x8] sm:$0xff]   ;;  %v825_v22 = vld [vmem:[%s1105_s3 + $0x10] sm:$0xff]  }
   0x8   :  { %709 = vmatprep.subr.bf16.mxu0 %v855_v0  ;;  %729 = vmatprep.subr.bf16.mxu1 %v855_v0  ;;  %v826_v23 = vld [vmem:[%s1105_s3 + $0x18] sm:$0xff]   ;;  %v827_v24 = vld [vmem:[%s1105_s3 + $0x20] sm:$0xff]   ;;  %v828_v25 = vld [vmem:[%s1105_s3 + $0x28] sm:$0xff]  }
   0x9   :  { %v829_v33 = vld [vmem:[%s1105_s3 + $0x30] sm:$0xff]   ;;  %v830_v34 = vld [vmem:[%s1105_s3 + $0x38] sm:$0xff]   ;;  %v831_v35 = vld [vmem:[%s1106_s4] sm:$0xff]  }
   0xa   :  { %v832_v36 = vld [vmem:[%s1106_s4 + $0x8] sm:$0xff]   ;;  %v833_v37 = vld [vmem:[%s1106_s4 + $0x10] sm:$0xff]   ;;  %v834_v38 = vld [vmem:[%s1106_s4 + $0x18] sm:$0xff]  }
   0xb   :  { %710 = vmatpush3.bf16.msra.mxu0 %v809_v3  ;;  %730 = vmatpush3.bf16.msra.mxu1 %v817_v8  ;;  %v835_v39 = vld [vmem:[%s1106_s4 + $0x20] sm:$0xff]   ;;  %v836_v40 = vld [vmem:[%s1106_s4 + $0x28] sm:$0xff]   ;;  %v837_v48 = vld [vmem:[%s1106_s4 + $0x30] sm:$0xff]  }
   0xc   :  { %711 = vmatprep.subr.bf16.mxu0 %v855_v0  ;;  %731 = vmatprep.subr.bf16.mxu1 %v855_v0  ;;  %v838_v49 = vld [vmem:[%s1106_s4 + $0x38] sm:$0xff]   ;;  %v839_v50 = vld [vmem:[%s1107_s5] sm:$0xff]   ;;  %v840_v51 = vld [vmem:[%s1107_s5 + $0x8] sm:$0xff]  }
   0xd   :  { %v841_v52 = vld [vmem:[%s1107_s5 + $0x10] sm:$0xff]   ;;  %v842_v53 = vld [vmem:[%s1107_s5 + $0x18] sm:$0xff]   ;;  %v843_v54 = vld [vmem:[%s1107_s5 + $0x20] sm:$0xff]  }
   0xe   :  { %v844_v55 = vld [vmem:[%s1107_s5 + $0x28] sm:$0xff]   ;;  %v845_v63 = vld [vmem:[%s1107_s5 + $0x30] sm:$0xff]   ;;  %v846_v1 = vld [vmem:[%s1107_s5 + $0x38] sm:$0xff]  }
   0xf   :  { %712 = vmatpush3.bf16.msra.mxu0 %v810_v5  ;;  %732 = vmatpush3.bf16.msra.mxu1 %v818_v10 }
  0x10   :  { %713 = vmatprep.subr.bf16.mxu0 %v855_v0  ;;  %733 = vmatprep.subr.bf16.mxu1 %v855_v0 }
  0x13   :  { %714 = vmatpush3.bf16.msra.mxu0 %v811_v7  ;;  %734 = vmatpush3.bf16.msra.mxu1 %v819_v12 }
  0x14   :  { %715 = vmatprep.subr.bf16.mxu0 %v855_v0  ;;  %735 = vmatprep.subr.bf16.mxu1 %v855_v0 }
  0x17   :  { %716 = vmatpush3.bf16.msra.mxu0 %v812_v9  ;;  %736 = vmatpush3.bf16.msra.mxu1 %v820_v16  ;;  %v564_v9 = vlaneseq }
  0x18   :  { %717 = vmatprep.subr.bf16.mxu0 %v855_v0  ;;  %737 = vmatprep.subr.bf16.mxu1 %v855_v0 }
  0x19   :  { %v565_v10 = vand.u32 127, %v564_v9 }
  0x1b   :  { %718 = vmatpush3.bf16.msra.mxu0 %v813_v11  ;;  %738 = vmatpush3.bf16.msra.mxu1 %v821_v18  ;;  %vm569_vm1 = vcmp.ge.s32.totalorder %v565_v10, 8  ;;  %vm570_vm2 = vcmp.lt.s32.totalorder %v565_v10, 16  ;;  %vm567_vm4 = vcmp.lt.s32.totalorder %v565_v10, 8 }
  0x1c   :  { %719 = vmatprep.subr.bf16.mxu0 %v855_v0  ;;  %739 = vmatprep.subr.bf16.mxu1 %v855_v0  ;;  %vm1068_vm3 = vmand %vm569_vm1, %vm570_vm2 }
  0x1f   :  { %720 = vmatpush3.bf16.msra.mxu0 %v814_v13  ;;  %740 = vmatpush3.bf16.msra.mxu1 %v822_v19 }
  0x20   :  { %745 = vmatprep.subr.bf16.mxu0 %v855_v0  ;;  %765 = vmatprep.subr.bf16.mxu1 %v855_v0 }
  0x22   :  { %722 = vmatmul.mubr.bf16.vlgmr.msra.gmra.mrb[0].mxu0 %v26_v17 }
  0x23   :  { %761 = vmatprep.mubr.msk.bf16.mxu0 %vm856_vm0, %v855_v0  ;;  %746 = vmatpush3.bf16.msra.mxu0 %v823_v20 }
  0x24   :  { %747 = vmatprep.subr.bf16.mxu0 %v855_v0 }
  0x27   :  { %748 = vmatpush3.bf16.msra.mxu0 %v824_v21 }
  0x28   :  { %749 = vmatprep.subr.bf16.mxu0 %v855_v0 }
  0x2b   :  { %750 = vmatpush3.bf16.msra.mxu0 %v825_v22 }
  0x2c   :  { %751 = vmatprep.subr.bf16.mxu0 %v855_v0 }
  0x2f   :  { %752 = vmatpush3.bf16.msra.mxu0 %v826_v23 }
  0x30   :  { %753 = vmatprep.subr.bf16.mxu0 %v855_v0 }
  0x33   :  { %754 = vmatpush3.bf16.msra.mxu0 %v827_v24 }
  0x34   :  { %755 = vmatprep.subr.bf16.mxu0 %v855_v0 }
  0x37   :  { %756 = vmatpush3.bf16.msra.mxu0 %v828_v25 }
  0x38   :  { %757 = vmatprep.subr.bf16.mxu0 %v855_v0 }
  0x3b   :  { %758 = vmatpush3.bf16.msra.mxu0 %v829_v33 }
  0x3c   :  { %759 = vmatprep.subr.bf16.mxu0 %v855_v0 }
  0x3f   :  { %760 = vmatpush3.bf16.msra.mxu0 %v830_v34 }
  0x40   :  { %785 = vmatprep.subr.bf16.mxu0 %v855_v0 }
  0xf5   :  { %v125_v26 = vpop.f32.mrb[0].mxu0 }
  0xf6   :  { %v723_v27 = vpop.f32.mrb[1].mxu0  ;;  %v132_v29 = vmax.f32 %v125_v26, 0.0 }
  0xf7   :  { %v128_v28 = vpop.f32.mrb[2].mxu0 }
  0xf8   :  { %v133_v30 = vmax.f32 %v128_v28, 0.0  ;;  %v724_v31 = vpop.f32.mrb[3].mxu0 }
  0xfa   :  { %v134_v32 = vpack.c.bf16 %v133_v30, %v132_v29 }
  0xfc   :  { %742 = vmatmul.mubr.bf16.vlgmr.msra.gmra.mrb[0].mxu1 %v134_v32 }
  0xfd   :  { %781 = vmatprep.mubr.msk.bf16.mxu1 %vm856_vm0, %v855_v0  ;;  %766 = vmatpush3.bf16.msra.mxu1 %v831_v35 }
  0xfe   :  { %767 = vmatprep.subr.bf16.mxu1 %v855_v0 }
 0x101   :  { %768 = vmatpush3.bf16.msra.mxu1 %v832_v36 }
 0x102   :  { %769 = vmatprep.subr.bf16.mxu1 %v855_v0 }
 0x105   :  { %770 = vmatpush3.bf16.msra.mxu1 %v833_v37 }
 0x106   :  { %771 = vmatprep.subr.bf16.mxu1 %v855_v0 }
 0x109   :  { %772 = vmatpush3.bf16.msra.mxu1 %v834_v38 }
 0x10a   :  { %773 = vmatprep.subr.bf16.mxu1 %v855_v0 }
 0x10d   :  { %774 = vmatpush3.bf16.msra.mxu1 %v835_v39 }
 0x10e   :  { %775 = vmatprep.subr.bf16.mxu1 %v855_v0 }
 0x111   :  { %776 = vmatpush3.bf16.msra.mxu1 %v836_v40 }
 0x112   :  { %777 = vmatprep.subr.bf16.mxu1 %v855_v0 }
 0x115   :  { %778 = vmatpush3.bf16.msra.mxu1 %v837_v48 }
 0x116   :  { %779 = vmatprep.subr.bf16.mxu1 %v855_v0 }
 0x119   :  { %780 = vmatpush3.bf16.msra.mxu1 %v838_v49 }
 0x1cf   :  { %v233_v41 = vpop.f32.mrb[0].mxu1 }
 0x1d0   :  { %v743_v42 = vpop.f32.mrb[1].mxu1  ;;  %v240_v44 = vmax.f32 %v233_v41, 0.0 }
 0x1d1   :  { %v236_v43 = vpop.f32.mrb[2].mxu1 }
 0x1d2   :  { %v241_v45 = vmax.f32 %v236_v43, 0.0  ;;  %v744_v46 = vpop.f32.mrb[3].mxu1 }
 0x1d4   :  { %v242_v47 = vpack.c.bf16 %v241_v45, %v240_v44 }
 0x1d6   :  { %762 = vmatmul.mubr.bf16.vlgmr.msra.gmra.mrb[4].mxu0 %v242_v47 }
 0x1d7   :  { %801 = vmatprep.mubr.msk.bf16.mxu0 %vm856_vm0, %v855_v0  ;;  %786 = vmatpush3.bf16.msra.mxu0 %v839_v50 }
 0x1d8   :  { %787 = vmatprep.subr.bf16.mxu0 %v855_v0 }
 0x1db   :  { %788 = vmatpush3.bf16.msra.mxu0 %v840_v51 }
 0x1dc   :  { %789 = vmatprep.subr.bf16.mxu0 %v855_v0 }
 0x1df   :  { %790 = vmatpush3.bf16.msra.mxu0 %v841_v52 }
 0x1e0   :  { %791 = vmatprep.subr.bf16.mxu0 %v855_v0 }
 0x1e3   :  { %792 = vmatpush3.bf16.msra.mxu0 %v842_v53 }
 0x1e4   :  { %793 = vmatprep.subr.bf16.mxu0 %v855_v0 }
 0x1e7   :  { %794 = vmatpush3.bf16.msra.mxu0 %v843_v54 }
 0x1e8   :  { %795 = vmatprep.subr.bf16.mxu0 %v855_v0 }
 0x1eb   :  { %796 = vmatpush3.bf16.msra.mxu0 %v844_v55 }
 0x1ec   :  { %797 = vmatprep.subr.bf16.mxu0 %v855_v0 }
 0x1ef   :  { %798 = vmatpush3.bf16.msra.mxu0 %v845_v63 }
 0x1f0   :  { %799 = vmatprep.subr.bf16.mxu0 %v855_v0 }
 0x1f3   :  { %800 = vmatpush3.bf16.msra.mxu0 %v846_v1 }
 0x2a9   :  { %v341_v56 = vpop.f32.mrb[4].mxu0 }
 0x2aa   :  { %v763_v57 = vpop.f32.mrb[5].mxu0  ;;  %v348_v59 = vmax.f32 %v341_v56, 0.0 }
 0x2ab   :  { %v344_v58 = vpop.f32.mrb[6].mxu0 }
 0x2ac   :  { %v349_v60 = vmax.f32 %v344_v58, 0.0  ;;  %v764_v61 = vpop.f32.mrb[7].mxu0 }
 0x2ae   :  { %v350_v62 = vpack.c.bf16 %v349_v60, %v348_v59 }
 0x2b0   :  { %782 = vmatmul.mubr.bf16.vlgmr.msra.gmra.mrb[4].mxu1 %v350_v62 }
 0x383   :  { %v449_v2 = vpop.f32.mrb[4].mxu1 }
 0x384   :  { %v783_v3 = vpop.f32.mrb[5].mxu1  ;;  %v456_v5 = vmax.f32 %v449_v2, 0.0 }
 0x385   :  { %v452_v4 = vpop.f32.mrb[6].mxu1 }
 0x386   :  { %v457_v6 = vmax.f32 %v452_v4, 0.0  ;;  %v784_v7 = vpop.f32.mrb[7].mxu1 }
 0x388   :  { %v458_v8 = vpack.c.bf16 %v457_v6, %v456_v5 }
 0x38a   :  { %802 = vmatmul.mubr.bf16.vlgmr.msra.gmra.mrb[8].mxu0 %v458_v8 }
 0x45d   :  { %v557_v0 = vpop.f32.mrb[8].mxu0 }
 0x45e   :  { %v803_v12 = vpop.f32.mrb[9].mxu0  ;;  %v580_v13 = vsel %vm1068_vm3, %v557_v0, -1e+30  ;;  %v572_v14 = vsel %vm567_vm4, %v557_v0, -1e+30 }
 0x45f   :  { %582 = vmax.xlane.f32.xlu1 %v580_v13  ;;  %574 = vmax.xlane.f32.xlu0 %v572_v14  ;;  %v560_v15 = vpop.f32.mrb[10].mxu0 }
 0x460   :  { %v804_v16 = vpop.f32.mrb[11].mxu0  ;;  %v581_v17 = vsel %vm1068_vm3, %v560_v15, -1e+30  ;;  %v573_v18 = vsel %vm567_vm4, %v560_v15, -1e+30 }
 0x463   :  { %584 = vmax.xlane.f32.xlu1 %v581_v17  ;;  %576 = vmax.xlane.f32.xlu0 %v573_v18 }
 0x4ec   :  { %v583_v19 = vpop.xlane.xlu1 %582  ;;  %v575_v20 = vpop.xlane.xlu0 %574 }
 0x4ed   :  { %v578_v21 = vsel %vm567_vm4, %v575_v20, 0.0 }
 0x4ee   :  { %v586_v22 = vsel %vm1068_vm3, %v583_v19, %v578_v21 }
 0x4ef   :  { %v588_v23 = vsub.f32 %v557_v0, %v586_v22 }
 0x4f0   :  { %v585_v24 = vpop.xlane.xlu1 %584  ;;  %v577_v25 = vpop.xlane.xlu0 %576 }
 0x4f1   :  { %v590_v26 = vmul.f32 1.442695, %v588_v23  ;;  %v579_v27 = vsel %vm567_vm4, %v577_v25, 0.0 }
 0x4f2   :  { %v587_v28 = vsel %vm1068_vm3, %v585_v24, %v579_v27 }
 0x4f3   :  { %847 = vpow2.f32 %v590_v26  ;;  %v589_v29 = vsub.f32 %v560_v15, %v587_v28 }
 0x4f5   :  { %v592_v30 = vmul.f32 1.442695, %v589_v29 }
 0x4f7   :  { %849 = vpow2.f32 %v592_v30 }
 0x4fd   :  { %v848_v31 = vpop.eup %847 }
 0x4fe   :  { %v594_v32 = vsel %vm567_vm4, %v848_v31, 0.0  ;;  %v602_v34 = vsel %vm1068_vm3, %v848_v31, 0.0 }
 0x4ff   :  { %596 = vadd.xlane.f32.xlu0 %v594_v32 }
 0x501   :  { %v850_v33 = vpop.eup %849 }
 0x502   :  { %v595_v35 = vsel %vm567_vm4, %v850_v33, 0.0  ;;  %v603_v36 = vsel %vm1068_vm3, %v850_v33, 0.0 }
 0x503   :  { %604 = vadd.xlane.f32.xlu0 %v602_v34  ;;  %598 = vadd.xlane.f32.xlu1 %v595_v35 }
 0x507   :  { %606 = vadd.xlane.f32.xlu1 %v603_v36 }
 0x58c   :  { %v597_v37 = vpop.xlane.xlu0 %596 }
 0x58d   :  { %v600_v38 = vsel %vm567_vm4, %v597_v37, 1.0 }
 0x590   :  { %v599_v39 = vpop.xlane.xlu1 %598  ;;  %v605_v40 = vpop.xlane.xlu0 %604 }
 0x591   :  { %v608_v41 = vsel %vm1068_vm3, %v605_v40, %v600_v38  ;;  %v601_v42 = vsel %vm567_vm4, %v599_v39, 1.0 }
 0x592   :  { %851 = vrcp.f32 %v608_v41 }
 0x594   :  { %v607_v43 = vpop.xlane.xlu1 %606 }
 0x595   :  { %v609_v44 = vsel %vm1068_vm3, %v607_v43, %v601_v42 }
 0x596   :  { %853 = vrcp.f32 %v609_v44 }
 0x59c   :  { %v852_v45 = vpop.eup %851 }
 0x59d   :  { %v612_v46 = vmul.f32 %v852_v45, %v848_v31 }
 0x59f   :  { %614 = vst [vmem:[%s1108_s6] sm:$0xff] %v612_v46 }
 0x5a0   :  { %v854_v47 = vpop.eup %853 }
 0x5a1   :  { %v613_v48 = vmul.f32 %v854_v47, %v850_v33 }
 0x5a3   :  { %615 = vst [vmem:[%s1108_s6 + $0x8] sm:$0xff] %v613_v48 }

</bundles_post_ra>
